<compile_context>
chip_gen: v7x
topology: tpu7x:2x2x1
jax: 0.10.0
libtpu: 0.0.40
codegen_flags: <defaults>
</compile_context>

<pallas_src>
import functools

import jax
import jax.numpy as jnp
from jax import lax
from jax.experimental import pallas as pl
from jax.experimental.pallas import tpu as pltpu


def _attention_kernel(x_q_ref, x_kv_ref, wq_ref, bq_ref, wkv_ref, bkv_ref,
                      wproj_ref, bproj_ref, o_ref, *, n_heads, head_dim):
    """One (batch, query-tile) step of multi-head self-attention.

    x_q_ref:  (1, tq, D) bf16   query-token rows of this tile
    x_kv_ref: (1, N,  D) bf16   all token rows of this batch element
    wq_ref:   (D, D)     bf16   q projection (scale pre-folded)
    bq_ref:   (1, D)     f32    q bias (scale pre-folded)
    wkv_ref:  (D, 2D)    bf16   k|v projection
    bkv_ref:  (1, 2D)    f32
    wproj_ref:(H, hd, D) bf16   output projection, one slab per head
    bproj_ref:(1, D)     f32
    o_ref:    (1, tq, D) out dtype
    """
    dim = n_heads * head_dim
    xq = x_q_ref[0]                     # (tq, D) bf16
    xkv = x_kv_ref[0]                   # (N, D)  bf16
    tq = xq.shape[0]

    # Projections: bf16 operands on the MXU, f32 accumulation, f32 bias add.
    q = jnp.dot(xq, wq_ref[...],
                preferred_element_type=jnp.float32) + bq_ref[0]      # (tq, D), pre-scaled
    kv = jnp.dot(xkv, wkv_ref[...],
                 preferred_element_type=jnp.float32) + bkv_ref[0]    # (N, 2D)

    q16 = q.astype(jnp.bfloat16)
    k16 = kv[:, :dim].astype(jnp.bfloat16)
    v16 = kv[:, dim:].astype(jnp.bfloat16)

    out_acc = jnp.zeros((tq, dim), jnp.float32)
    for h in range(n_heads):            # static unroll, H is small (e.g. 12)
        lo = h * head_dim
        hi = lo + head_dim
        q_h = q16[:, lo:hi]             # (tq, hd) bf16 (already scaled)
        k_h = k16[:, lo:hi]             # (N, hd)  bf16
        v_h = v16[:, lo:hi]             # (N, hd)  bf16

        # scores = q_h @ k_h^T without materializing a transpose.
        s = lax.dot_general(q_h, k_h,
                            dimension_numbers=(((1,), (1,)), ((), ())),
                            preferred_element_type=jnp.float32)      # (tq, N) f32

        # Softmax: stats in f32; denominator applied after PV on the small tensor.
        m = jnp.max(s, axis=-1, keepdims=True)
        p = jnp.exp(s - m)                                           # (tq, N) f32
        denom = jnp.sum(p, axis=-1, keepdims=True)                   # (tq, 1) f32
        # TODO(synk): attn_drop / proj_drop are nn.Dropout(p=0.0) -> identity.

        o_h = jnp.dot(p.astype(jnp.bfloat16), v_h,
                      preferred_element_type=jnp.float32)            # (tq, hd) f32
        o_h = o_h * pl.reciprocal(denom, approx=True)                # EUP slot

        # Fused head-concat + output projection: accumulate this head's
        # contribution o_h @ Wproj[h] into the f32 accumulator.
        out_acc = out_acc + jnp.dot(o_h.astype(jnp.bfloat16), wproj_ref[h],
                                    preferred_element_type=jnp.float32)

    o_ref[0] = (out_acc + bproj_ref[0]).astype(o_ref.dtype)


def _pick_q_tile(n):
    """Query-tile size: >=256 rows for the 256-wide v6e/v7x MXU when possible."""
    if n <= 256:
        return n
    for tq in (256, 128):
        if n % tq == 0:
            return tq
    return n  # ragged N: fall back to a single full tile (still correct)


def _vmem_limit_bytes(n, tq, d):
    """Explicit scoped-VMEM budget from the actual footprint (v5e default 16 MiB)."""
    bf16, f32 = 2, 4
    weights = bf16 * (d * d + d * 2 * d + d * d) + f32 * 4 * d          # single-buffered
    x_tiles = 2 * bf16 * (tq * d) + 2 * bf16 * (n * d)                   # double-buffered
    out_tiles = 2 * f32 * (tq * d)
    inter = f32 * (tq * d + n * 2 * d + 2 * tq * n + 2 * tq * d)         # q, kv, s, p, acc
    est = weights + x_tiles + out_tiles + inter
    return int(min(max(2 * est, 32 * 1024 * 1024), 100 * 1024 * 1024))


def attention_pallas(x, wqkv, bqkv, wproj, bproj, *, n_heads):
    """x: (B, N, D). wqkv: (3D, D) torch-layout, bqkv: (3D,),
    wproj: (D, D) torch-layout, bproj: (D,)."""
    B, N, D = x.shape
    head_dim = D // n_heads
    scale = head_dim ** (-0.5)
    tq = _pick_q_tile(N)
    nqt = N // tq

    # Host-side (free) prep:
    #  * fold 1/sqrt(hd) into the q projection weights + bias,
    #  * pre-transpose torch (out,in) weights to (in,out),
    #  * reshape W_proj^T to (H, hd, D) so per-head slabs are leading-dim indexed,
    #  * cast weights + activations to bf16 (halves HBM/VMEM, ~2x MXU throughput),
    #    biases stay f32 for the f32 accumulators.
    wq_t = (wqkv[:D, :].T * scale).astype(jnp.bfloat16)        # (D, D)
    wkv_t = wqkv[D:, :].T.astype(jnp.bfloat16)                 # (D, 2D)
    bq = (bqkv[:D] * scale).astype(jnp.float32).reshape(1, D)
    bkv = bqkv[D:].astype(jnp.float32).reshape(1, 2 * D)
    wproj_r = wproj.T.reshape(n_heads, head_dim, D).astype(jnp.bfloat16)
    bproj_2d = bproj.astype(jnp.float32).reshape(1, D)
    x16 = x.astype(jnp.bfloat16)

    kernel = functools.partial(_attention_kernel,
                               n_heads=n_heads, head_dim=head_dim)

    resident = dict(pipeline_mode=pl.Buffered(1))  # constant-index operands: 1 buffer

    return pl.pallas_call(
        kernel,
        out_shape=jax.ShapeDtypeStruct((B, N, D), x.dtype),
        grid_spec=pltpu.PrefetchScalarGridSpec(
            num_scalar_prefetch=0,
            grid=(B, nqt),
            in_specs=[
                pl.BlockSpec((1, tq, D), lambda b, qi: (b, qi, 0)),          # x (q rows)
                pl.BlockSpec((1, N, D), lambda b, qi: (b, 0, 0)),            # x (kv rows)
                pl.BlockSpec((D, D), lambda b, qi: (0, 0), **resident),      # Wq^T * scale
                pl.BlockSpec((1, D), lambda b, qi: (0, 0), **resident),      # bq * scale
                pl.BlockSpec((D, 2 * D), lambda b, qi: (0, 0), **resident),  # Wkv^T
                pl.BlockSpec((1, 2 * D), lambda b, qi: (0, 0), **resident),  # bkv
                pl.BlockSpec((n_heads, head_dim, D),
                             lambda b, qi: (0, 0, 0), **resident),           # Wproj^T slabs
                pl.BlockSpec((1, D), lambda b, qi: (0, 0), **resident),      # bproj
            ],
            out_specs=pl.BlockSpec((1, tq, D), lambda b, qi: (b, qi, 0)),
        ),
        compiler_params=pltpu.CompilerParams(
            dimension_semantics=("parallel", "parallel"),
            vmem_limit_bytes=_vmem_limit_bytes(N, tq, D)),
    )(x16, x16, wq_t, bq, wkv_t, bkv, wproj_r, bproj_2d)


def attention_ref(x, wqkv, bqkv, wproj, bproj, *, n_heads):
    """Pure-JAX f32 reference mirroring the PyTorch forward."""
    B, N, D = x.shape
    hd = D // n_heads
    scale = hd ** (-0.5)
    qkv = x @ wqkv.T + bqkv                          # (B, N, 3D)
    qkv = qkv.reshape(B, N, 3, n_heads, hd).transpose(2, 0, 3, 1, 4)
    q, k, v = qkv[0], qkv[1], qkv[2]                 # (B, H, N, hd)
    dp = jnp.einsum("bhnd,bhmd->bhnm", q, k) * scale
    attn = jax.nn.softmax(dp, axis=-1)
    wa = jnp.einsum("bhnm,bhmd->bhnd", attn, v)      # (B, H, N, hd)
    wa = wa.transpose(0, 2, 1, 3).reshape(B, N, D)
    return wa @ wproj.T + bproj


if __name__ == "__main__":
    B, N, D, H = 2, 8, 32, 4                         # batch, tokens, dim, heads

    key = jax.random.PRNGKey(0)
    kx, k1, k2, k3, k4 = jax.random.split(key, 5)
    x = jax.random.normal(kx, (B, N, D), dtype=jnp.float32)
    wqkv = jax.random.normal(k1, (3 * D, D), dtype=jnp.float32) * 0.05
    bqkv = jax.random.normal(k2, (3 * D,), dtype=jnp.float32) * 0.05
    wproj = jax.random.normal(k3, (D, D), dtype=jnp.float32) * 0.05
    bproj = jax.random.normal(k4, (D,), dtype=jnp.float32) * 0.05

    out = attention_pallas(x, wqkv, bqkv, wproj, bproj, n_heads=H)
    out = jax.block_until_ready(out)

    ref = attention_ref(x, wqkv, bqkv, wproj, bproj, n_heads=H)
    assert out.shape == (B, N, D)
    max_err = float(jnp.max(jnp.abs(out - ref)))
    # bf16 MXU operands -> relaxed tolerance vs the pure-f32 reference.
    assert jnp.allclose(out, ref, atol=3e-2, rtol=3e-2), \
        f"mismatch vs reference, max abs err {max_err}"

    print("KERNEL_OK")
</pallas_src>

<mosaic_0001>
module attributes {stable_mosaic.version = 11 : i64} {
  func.func @_attention_kernel(%arg0: i32, %arg1: i32, %arg2: memref<1x8x32xbf16, #tpu.memory_space<vmem>>, %arg3: memref<1x8x32xbf16, #tpu.memory_space<vmem>>, %arg4: memref<32x32xbf16, #tpu.memory_space<vmem>>, %arg5: memref<1x32xf32, #tpu.memory_space<vmem>>, %arg6: memref<32x64xbf16, #tpu.memory_space<vmem>>, %arg7: memref<1x64xf32, #tpu.memory_space<vmem>>, %arg8: memref<4x8x32xbf16, #tpu.memory_space<vmem>>, %arg9: memref<1x32xf32, #tpu.memory_space<vmem>>, %arg10: memref<1x8x32xf32, #tpu.memory_space<vmem>>) attributes {dimension_semantics = [#tpu.dimension_semantics<parallel>, #tpu.dimension_semantics<parallel>], iteration_bounds = array<i64: 2, 1>, scalar_prefetch = 0 : i64, scratch_operands = 0 : i64, tpu.core_type = #tpu.core_type<tc>, window_params = [{transform_indices = @transform_0, window_bounds = array<i64: 1, 8, 32>}, {transform_indices = @transform_1, window_bounds = array<i64: 1, 8, 32>}, {pipeline_mode = #tpu.pipeline_mode<synchronous>, transform_indices = @transform_2, window_bounds = array<i64: 32, 32>}, {pipeline_mode = #tpu.pipeline_mode<synchronous>, transform_indices = @transform_3, window_bounds = array<i64: 1, 32>}, {pipeline_mode = #tpu.pipeline_mode<synchronous>, transform_indices = @transform_4, window_bounds = array<i64: 32, 64>}, {pipeline_mode = #tpu.pipeline_mode<synchronous>, transform_indices = @transform_5, window_bounds = array<i64: 1, 64>}, {pipeline_mode = #tpu.pipeline_mode<synchronous>, transform_indices = @transform_6, window_bounds = array<i64: 4, 8, 32>}, {pipeline_mode = #tpu.pipeline_mode<synchronous>, transform_indices = @transform_7, window_bounds = array<i64: 1, 32>}, {transform_indices = @transform_8, window_bounds = array<i64: 1, 8, 32>}]} {
    %c0 = arith.constant 0 : index
    %c0_0 = arith.constant 0 : index
    %c0_1 = arith.constant 0 : index
    %0 = vector.load %arg2[%c0, %c0_0, %c0_1] : memref<1x8x32xbf16, #tpu.memory_space<vmem>>, vector<1x8x32xbf16>
    %1 = vector.shape_cast %0 : vector<1x8x32xbf16> to vector<8x32xbf16>
    %c0_2 = arith.constant 0 : index
    %c0_3 = arith.constant 0 : index
    %c0_4 = arith.constant 0 : index
    %2 = vector.load %arg3[%c0_2, %c0_3, %c0_4] : memref<1x8x32xbf16, #tpu.memory_space<vmem>>, vector<1x8x32xbf16>
    %3 = vector.shape_cast %2 : vector<1x8x32xbf16> to vector<8x32xbf16>
    %c0_5 = arith.constant 0 : index
    %c0_6 = arith.constant 0 : index
    %4 = vector.load %arg4[%c0_5, %c0_6] : memref<32x32xbf16, #tpu.memory_space<vmem>>, vector<32x32xbf16>
    %cst = arith.constant dense<0.000000e+00> : vector<8x32xf32>
    %5 = tpu.matmul %1, %4, %cst {dimension_numbers = #tpu.dot_dimension_numbers<[1], [0], [0], [1], [0, 0, 1, 1], [], []>} : vector<8x32xbf16>, vector<32x32xbf16>, vector<8x32xf32> -> vector<8x32xf32>
    %c0_7 = arith.constant 0 : index
    %c0_8 = arith.constant 0 : index
    %6 = vector.load %arg5[%c0_7, %c0_8] : memref<1x32xf32, #tpu.memory_space<vmem>>, vector<1x32xf32>
    %7 = vector.shape_cast %6 : vector<1x32xf32> to vector<32xf32>
    %8 = vector.shape_cast %7 : vector<32xf32> to vector<1x32xf32>
    %9 = vector.broadcast %8 : vector<1x32xf32> to vector<8x32xf32>
    %10 = arith.addf %5, %9 : vector<8x32xf32>
    %c0_9 = arith.constant 0 : index
    %c0_10 = arith.constant 0 : index
    %11 = vector.load %arg6[%c0_9, %c0_10] : memref<32x64xbf16, #tpu.memory_space<vmem>>, vector<32x64xbf16>
    %cst_11 = arith.constant dense<0.000000e+00> : vector<8x64xf32>
    %12 = tpu.matmul %3, %11, %cst_11 {dimension_numbers = #tpu.dot_dimension_numbers<[1], [0], [0], [1], [0, 0, 1, 1], [], []>} : vector<8x32xbf16>, vector<32x64xbf16>, vector<8x64xf32> -> vector<8x64xf32>
    %c0_12 = arith.constant 0 : index
    %c0_13 = arith.constant 0 : index
    %13 = vector.load %arg7[%c0_12, %c0_13] : memref<1x64xf32, #tpu.memory_space<vmem>>, vector<1x64xf32>
    %14 = vector.shape_cast %13 : vector<1x64xf32> to vector<64xf32>
    %15 = vector.shape_cast %14 : vector<64xf32> to vector<1x64xf32>
    %16 = vector.broadcast %15 : vector<1x64xf32> to vector<8x64xf32>
    %17 = arith.addf %12, %16 : vector<8x64xf32>
    %18 = arith.truncf %10 : vector<8x32xf32> to vector<8x32xbf16>
    %19 = vector.extract_strided_slice %17 {offsets = [0, 0], sizes = [8, 32], strides = [1, 1]} : vector<8x64xf32> to vector<8x32xf32>
    %20 = arith.truncf %19 : vector<8x32xf32> to vector<8x32xbf16>
    %21 = vector.extract_strided_slice %17 {offsets = [0, 32], sizes = [8, 32], strides = [1, 1]} : vector<8x64xf32> to vector<8x32xf32>
    %22 = arith.truncf %21 : vector<8x32xf32> to vector<8x32xbf16>
    %cst_14 = arith.constant 0.000000e+00 : f32
    %23 = vector.broadcast %cst_14 : f32 to vector<8x32xf32>
    %24 = vector.extract_strided_slice %18 {offsets = [0, 0], sizes = [8, 8], strides = [1, 1]} : vector<8x32xbf16> to vector<8x8xbf16>
    %25 = vector.extract_strided_slice %20 {offsets = [0, 0], sizes = [8, 8], strides = [1, 1]} : vector<8x32xbf16> to vector<8x8xbf16>
    %26 = vector.extract_strided_slice %22 {offsets = [0, 0], sizes = [8, 8], strides = [1, 1]} : vector<8x32xbf16> to vector<8x8xbf16>
    %cst_15 = arith.constant dense<0.000000e+00> : vector<8x8xf32>
    %27 = tpu.matmul %24, %25, %cst_15 {dimension_numbers = #tpu.dot_dimension_numbers<[1], [1], [0], [0], [0, 0, 1, 0], [], []>} : vector<8x8xbf16>, vector<8x8xbf16>, vector<8x8xf32> -> vector<8x8xf32>
    %cst_16 = arith.constant dense<0xFF800000> : vector<8xf32>
    %28 = vector.multi_reduction <maximumf>, %27, %cst_16 [1] : vector<8x8xf32> to vector<8xf32>
    %29 = vector.shape_cast %28 : vector<8xf32> to vector<8x1xf32>
    %30 = vector.broadcast %29 : vector<8x1xf32> to vector<8x8xf32>
    %31 = arith.subf %27, %30 : vector<8x8xf32>
    %32 = math.exp %31 : vector<8x8xf32>
    %cst_17 = arith.constant dense<0.000000e+00> : vector<8xf32>
    %33 = vector.multi_reduction <add>, %32, %cst_17 [1] : vector<8x8xf32> to vector<8xf32>
    %34 = vector.shape_cast %33 : vector<8xf32> to vector<8x1xf32>
    %35 = arith.truncf %32 : vector<8x8xf32> to vector<8x8xbf16>
    %cst_18 = arith.constant dense<0.000000e+00> : vector<8x8xf32>
    %36 = tpu.matmul %35, %26, %cst_18 {dimension_numbers = #tpu.dot_dimension_numbers<[1], [0], [0], [1], [0, 0, 1, 1], [], []>} : vector<8x8xbf16>, vector<8x8xbf16>, vector<8x8xf32> -> vector<8x8xf32>
    %37 = tpu.reciprocal %34 {approx = true} : vector<8x1xf32> -> vector<8x1xf32>
    %38 = vector.broadcast %37 : vector<8x1xf32> to vector<8x8xf32>
    %39 = arith.mulf %36, %38 : vector<8x8xf32>
    %40 = arith.truncf %39 : vector<8x8xf32> to vector<8x8xbf16>
    %c0_19 = arith.constant 0 : index
    %c0_20 = arith.constant 0 : index
    %c0_21 = arith.constant 0 : index
    %41 = vector.load %arg8[%c0_19, %c0_20, %c0_21] : memref<4x8x32xbf16, #tpu.memory_space<vmem>>, vector<1x8x32xbf16>
    %42 = vector.shape_cast %41 : vector<1x8x32xbf16> to vector<8x32xbf16>
    %cst_22 = arith.constant dense<0.000000e+00> : vector<8x32xf32>
    %43 = tpu.matmul %40, %42, %cst_22 {dimension_numbers = #tpu.dot_dimension_numbers<[1], [0], [0], [1], [0, 0, 1, 1], [], []>} : vector<8x8xbf16>, vector<8x32xbf16>, vector<8x32xf32> -> vector<8x32xf32>
    %44 = arith.addf %23, %43 : vector<8x32xf32>
    %45 = vector.extract_strided_slice %18 {offsets = [0, 8], sizes = [8, 8], strides = [1, 1]} : vector<8x32xbf16> to vector<8x8xbf16>
    %46 = vector.extract_strided_slice %20 {offsets = [0, 8], sizes = [8, 8], strides = [1, 1]} : vector<8x32xbf16> to vector<8x8xbf16>
    %47 = vector.extract_strided_slice %22 {offsets = [0, 8], sizes = [8, 8], strides = [1, 1]} : vector<8x32xbf16> to vector<8x8xbf16>
    %cst_23 = arith.constant dense<0.000000e+00> : vector<8x8xf32>
    %48 = tpu.matmul %45, %46, %cst_23 {dimension_numbers = #tpu.dot_dimension_numbers<[1], [1], [0], [0], [0, 0, 1, 0], [], []>} : vector<8x8xbf16>, vector<8x8xbf16>, vector<8x8xf32> -> vector<8x8xf32>
    %cst_24 = arith.constant dense<0xFF800000> : vector<8xf32>
    %49 = vector.multi_reduction <maximumf>, %48, %cst_24 [1] : vector<8x8xf32> to vector<8xf32>
    %50 = vector.shape_cast %49 : vector<8xf32> to vector<8x1xf32>
    %51 = vector.broadcast %50 : vector<8x1xf32> to vector<8x8xf32>
    %52 = arith.subf %48, %51 : vector<8x8xf32>
    %53 = math.exp %52 : vector<8x8xf32>
    %cst_25 = arith.constant dense<0.000000e+00> : vector<8xf32>
    %54 = vector.multi_reduction <add>, %53, %cst_25 [1] : vector<8x8xf32> to vector<8xf32>
    %55 = vector.shape_cast %54 : vector<8xf32> to vector<8x1xf32>
    %56 = arith.truncf %53 : vector<8x8xf32> to vector<8x8xbf16>
    %cst_26 = arith.constant dense<0.000000e+00> : vector<8x8xf32>
    %57 = tpu.matmul %56, %47, %cst_26 {dimension_numbers = #tpu.dot_dimension_numbers<[1], [0], [0], [1], [0, 0, 1, 1], [], []>} : vector<8x8xbf16>, vector<8x8xbf16>, vector<8x8xf32> -> vector<8x8xf32>
    %58 = tpu.reciprocal %55 {approx = true} : vector<8x1xf32> -> vector<8x1xf32>
    %59 = vector.broadcast %58 : vector<8x1xf32> to vector<8x8xf32>
    %60 = arith.mulf %57, %59 : vector<8x8xf32>
    %61 = arith.truncf %60 : vector<8x8xf32> to vector<8x8xbf16>
    %c1 = arith.constant 1 : index
    %c0_27 = arith.constant 0 : index
    %c0_28 = arith.constant 0 : index
    %62 = vector.load %arg8[%c1, %c0_27, %c0_28] : memref<4x8x32xbf16, #tpu.memory_space<vmem>>, vector<1x8x32xbf16>
    %63 = vector.shape_cast %62 : vector<1x8x32xbf16> to vector<8x32xbf16>
    %cst_29 = arith.constant dense<0.000000e+00> : vector<8x32xf32>
    %64 = tpu.matmul %61, %63, %cst_29 {dimension_numbers = #tpu.dot_dimension_numbers<[1], [0], [0], [1], [0, 0, 1, 1], [], []>} : vector<8x8xbf16>, vector<8x32xbf16>, vector<8x32xf32> -> vector<8x32xf32>
    %65 = arith.addf %44, %64 : vector<8x32xf32>
    %66 = vector.extract_strided_slice %18 {offsets = [0, 16], sizes = [8, 8], strides = [1, 1]} : vector<8x32xbf16> to vector<8x8xbf16>
    %67 = vector.extract_strided_slice %20 {offsets = [0, 16], sizes = [8, 8], strides = [1, 1]} : vector<8x32xbf16> to vector<8x8xbf16>
    %68 = vector.extract_strided_slice %22 {offsets = [0, 16], sizes = [8, 8], strides = [1, 1]} : vector<8x32xbf16> to vector<8x8xbf16>
    %cst_30 = arith.constant dense<0.000000e+00> : vector<8x8xf32>
    %69 = tpu.matmul %66, %67, %cst_30 {dimension_numbers = #tpu.dot_dimension_numbers<[1], [1], [0], [0], [0, 0, 1, 0], [], []>} : vector<8x8xbf16>, vector<8x8xbf16>, vector<8x8xf32> -> vector<8x8xf32>
    %cst_31 = arith.constant dense<0xFF800000> : vector<8xf32>
    %70 = vector.multi_reduction <maximumf>, %69, %cst_31 [1] : vector<8x8xf32> to vector<8xf32>
    %71 = vector.shape_cast %70 : vector<8xf32> to vector<8x1xf32>
    %72 = vector.broadcast %71 : vector<8x1xf32> to vector<8x8xf32>
    %73 = arith.subf %69, %72 : vector<8x8xf32>
    %74 = math.exp %73 : vector<8x8xf32>
    %cst_32 = arith.constant dense<0.000000e+00> : vector<8xf32>
    %75 = vector.multi_reduction <add>, %74, %cst_32 [1] : vector<8x8xf32> to vector<8xf32>
    %76 = vector.shape_cast %75 : vector<8xf32> to vector<8x1xf32>
    %77 = arith.truncf %74 : vector<8x8xf32> to vector<8x8xbf16>
    %cst_33 = arith.constant dense<0.000000e+00> : vector<8x8xf32>
    %78 = tpu.matmul %77, %68, %cst_33 {dimension_numbers = #tpu.dot_dimension_numbers<[1], [0], [0], [1], [0, 0, 1, 1], [], []>} : vector<8x8xbf16>, vector<8x8xbf16>, vector<8x8xf32> -> vector<8x8xf32>
    %79 = tpu.reciprocal %76 {approx = true} : vector<8x1xf32> -> vector<8x1xf32>
    %80 = vector.broadcast %79 : vector<8x1xf32> to vector<8x8xf32>
    %81 = arith.mulf %78, %80 : vector<8x8xf32>
    %82 = arith.truncf %81 : vector<8x8xf32> to vector<8x8xbf16>
    %c2 = arith.constant 2 : index
    %c0_34 = arith.constant 0 : index
    %c0_35 = arith.constant 0 : index
    %83 = vector.load %arg8[%c2, %c0_34, %c0_35] : memref<4x8x32xbf16, #tpu.memory_space<vmem>>, vector<1x8x32xbf16>
    %84 = vector.shape_cast %83 : vector<1x8x32xbf16> to vector<8x32xbf16>
    %cst_36 = arith.constant dense<0.000000e+00> : vector<8x32xf32>
    %85 = tpu.matmul %82, %84, %cst_36 {dimension_numbers = #tpu.dot_dimension_numbers<[1], [0], [0], [1], [0, 0, 1, 1], [], []>} : vector<8x8xbf16>, vector<8x32xbf16>, vector<8x32xf32> -> vector<8x32xf32>
    %86 = arith.addf %65, %85 : vector<8x32xf32>
    %87 = vector.extract_strided_slice %18 {offsets = [0, 24], sizes = [8, 8], strides = [1, 1]} : vector<8x32xbf16> to vector<8x8xbf16>
    %88 = vector.extract_strided_slice %20 {offsets = [0, 24], sizes = [8, 8], strides = [1, 1]} : vector<8x32xbf16> to vector<8x8xbf16>
    %89 = vector.extract_strided_slice %22 {offsets = [0, 24], sizes = [8, 8], strides = [1, 1]} : vector<8x32xbf16> to vector<8x8xbf16>
    %cst_37 = arith.constant dense<0.000000e+00> : vector<8x8xf32>
    %90 = tpu.matmul %87, %88, %cst_37 {dimension_numbers = #tpu.dot_dimension_numbers<[1], [1], [0], [0], [0, 0, 1, 0], [], []>} : vector<8x8xbf16>, vector<8x8xbf16>, vector<8x8xf32> -> vector<8x8xf32>
    %cst_38 = arith.constant dense<0xFF800000> : vector<8xf32>
    %91 = vector.multi_reduction <maximumf>, %90, %cst_38 [1] : vector<8x8xf32> to vector<8xf32>
    %92 = vector.shape_cast %91 : vector<8xf32> to vector<8x1xf32>
    %93 = vector.broadcast %92 : vector<8x1xf32> to vector<8x8xf32>
    %94 = arith.subf %90, %93 : vector<8x8xf32>
    %95 = math.exp %94 : vector<8x8xf32>
    %cst_39 = arith.constant dense<0.000000e+00> : vector<8xf32>
    %96 = vector.multi_reduction <add>, %95, %cst_39 [1] : vector<8x8xf32> to vector<8xf32>
    %97 = vector.shape_cast %96 : vector<8xf32> to vector<8x1xf32>
    %98 = arith.truncf %95 : vector<8x8xf32> to vector<8x8xbf16>
    %cst_40 = arith.constant dense<0.000000e+00> : vector<8x8xf32>
    %99 = tpu.matmul %98, %89, %cst_40 {dimension_numbers = #tpu.dot_dimension_numbers<[1], [0], [0], [1], [0, 0, 1, 1], [], []>} : vector<8x8xbf16>, vector<8x8xbf16>, vector<8x8xf32> -> vector<8x8xf32>
    %100 = tpu.reciprocal %97 {approx = true} : vector<8x1xf32> -> vector<8x1xf32>
    %101 = vector.broadcast %100 : vector<8x1xf32> to vector<8x8xf32>
    %102 = arith.mulf %99, %101 : vector<8x8xf32>
    %103 = arith.truncf %102 : vector<8x8xf32> to vector<8x8xbf16>
    %c3 = arith.constant 3 : index
    %c0_41 = arith.constant 0 : index
    %c0_42 = arith.constant 0 : index
    %104 = vector.load %arg8[%c3, %c0_41, %c0_42] : memref<4x8x32xbf16, #tpu.memory_space<vmem>>, vector<1x8x32xbf16>
    %105 = vector.shape_cast %104 : vector<1x8x32xbf16> to vector<8x32xbf16>
    %cst_43 = arith.constant dense<0.000000e+00> : vector<8x32xf32>
    %106 = tpu.matmul %103, %105, %cst_43 {dimension_numbers = #tpu.dot_dimension_numbers<[1], [0], [0], [1], [0, 0, 1, 1], [], []>} : vector<8x8xbf16>, vector<8x32xbf16>, vector<8x32xf32> -> vector<8x32xf32>
    %107 = arith.addf %86, %106 : vector<8x32xf32>
    %c0_44 = arith.constant 0 : index
    %c0_45 = arith.constant 0 : index
    %108 = vector.load %arg9[%c0_44, %c0_45] : memref<1x32xf32, #tpu.memory_space<vmem>>, vector<1x32xf32>
    %109 = vector.shape_cast %108 : vector<1x32xf32> to vector<32xf32>
    %110 = vector.shape_cast %109 : vector<32xf32> to vector<1x32xf32>
    %111 = vector.broadcast %110 : vector<1x32xf32> to vector<8x32xf32>
    %112 = arith.addf %107, %111 : vector<8x32xf32>
    %c0_46 = arith.constant 0 : index
    %c0_47 = arith.constant 0 : index
    %c0_48 = arith.constant 0 : index
    %113 = vector.load %arg10[%c0_46, %c0_47, %c0_48] : memref<1x8x32xf32, #tpu.memory_space<vmem>>, vector<1x8x32xf32>
    %114 = vector.shape_cast %113 : vector<1x8x32xf32> to vector<8x32xf32>
    %115 = vector.shape_cast %112 : vector<8x32xf32> to vector<1x8x32xf32>
    tpu.vector_store %arg10[%c0_46, %c0_47, %c0_48], %115 {strides = array<i32>} : memref<1x8x32xf32, #tpu.memory_space<vmem>>, vector<1x8x32xf32>,
    return
  }
  func.func @transform_0(%arg0: i32, %arg1: i32) -> (i32, i32, i32) {
    %c0_i32 = arith.constant 0 : i32
    %c0_i32_0 = arith.constant 0 : i32
    return %arg0, %arg1, %c0_i32 : i32, i32, i32
  }
  func.func @transform_1(%arg0: i32, %arg1: i32) -> (i32, i32, i32) {
    %c0_i32 = arith.constant 0 : i32
    %c0_i32_0 = arith.constant 0 : i32
    %c0_i32_1 = arith.constant 0 : i32
    return %arg0, %c0_i32, %c0_i32_0 : i32, i32, i32
  }
  func.func @transform_2(%arg0: i32, %arg1: i32) -> (i32, i32) {
    %c0_i32 = arith.constant 0 : i32
    %c0_i32_0 = arith.constant 0 : i32
    %c0_i32_1 = arith.constant 0 : i32
    return %c0_i32, %c0_i32_0 : i32, i32
  }
  func.func @transform_3(%arg0: i32, %arg1: i32) -> (i32, i32) {
    %c0_i32 = arith.constant 0 : i32
    %c0_i32_0 = arith.constant 0 : i32
    %c0_i32_1 = arith.constant 0 : i32
    return %c0_i32, %c0_i32_0 : i32, i32
  }
  func.func @transform_4(%arg0: i32, %arg1: i32) -> (i32, i32) {
    %c0_i32 = arith.constant 0 : i32
    %c0_i32_0 = arith.constant 0 : i32
    %c0_i32_1 = arith.constant 0 : i32
    return %c0_i32, %c0_i32_0 : i32, i32
  }
  func.func @transform_5(%arg0: i32, %arg1: i32) -> (i32, i32) {
    %c0_i32 = arith.constant 0 : i32
    %c0_i32_0 = arith.constant 0 : i32
    %c0_i32_1 = arith.constant 0 : i32
    return %c0_i32, %c0_i32_0 : i32, i32
  }
  func.func @transform_6(%arg0: i32, %arg1: i32) -> (i32, i32, i32) {
    %c0_i32 = arith.constant 0 : i32
    %c0_i32_0 = arith.constant 0 : i32
    %c0_i32_1 = arith.constant 0 : i32
    %c0_i32_2 = arith.constant 0 : i32
    return %c0_i32, %c0_i32_0, %c0_i32_1 : i32, i32, i32
  }
  func.func @transform_7(%arg0: i32, %arg1: i32) -> (i32, i32) {
    %c0_i32 = arith.constant 0 : i32
    %c0_i32_0 = arith.constant 0 : i32
    %c0_i32_1 = arith.constant 0 : i32
    return %c0_i32, %c0_i32_0 : i32, i32
  }
  func.func @transform_8(%arg0: i32, %arg1: i32) -> (i32, i32, i32) {
    %c0_i32 = arith.constant 0 : i32
    %c0_i32_0 = arith.constant 0 : i32
    return %arg0, %arg1, %c0_i32 : i32, i32, i32
  }
}

</mosaic_0001>

<bundles_post_ra>
// kernel: tpu_custom_call.1
= control target key start
LH: loop header
LB: loop body
LE: loop exit
PB: predicated region body
PF: predicated region fallthrough
CT: control target
= control target key end

     0   :  { %s2279_s0 = inlined_call_operand.hbm [shape: bf16[2,8,32], index: 0, kind: input, shape index: {}]   ;;  %s2280_s1 = inlined_call_operand.hbm [shape: bf16[2,8,32], index: 1, kind: input, shape index: {}]   ;;  %s2281_s2 = inlined_call_operand.hbm [shape: bf16[32,32], index: 2, kind: input, shape index: {}]   ;;  %s2282_s3 = inlined_call_operand.vmem [shape: f32[1,32], index: 3, kind: input, shape index: {}]   ;;  %s2283_s4 = inlined_call_operand.hbm [shape: bf16[32,64], index: 4, kind: input, shape index: {}]   ;;  %s2284_s5 = inlined_call_operand.vmem [shape: f32[1,64], index: 5, kind: input, shape index: {}]   ;;  %s2285_s6 = inlined_call_operand.vmem [shape: bf16[4,8,32], index: 6, kind: input, shape index: {}]   ;;  %s2286_s7 = inlined_call_operand.vmem [shape: f32[1,32], index: 7, kind: input, shape index: {}]   ;;  %s2287_s8 = inlined_call_operand.hbm [shape: f32[2,8,32], index: 8, kind: output, shape index: {}]  }
   0x1   :  { %2296 = sst [smem:[#allocation21_spill]] %s2281_s2 }
   0x2   :  { %2297 = sst [smem:[#allocation22_spill]] %s2283_s4 }
   0x3   :  { %13 = vsyncpa [#allocation3], 0 }
   0x4   :  { %15 = vsyncpa [#allocation3 + $0x1], 0 }
   0x5   :  { %16 = vsyncpa [#allocation6], 0 }
   0x6   :  { %18 = vsyncpa [#allocation6 + $0x1], 0 }
   0x7   :  { %19 = vsyncpa [#allocation9], 0 }
   0x8   :  { %20 = vsyncpa [#allocation4], 0 }
   0x9   :  { %22 = vsyncpa [#allocation4 + $0x1], 0  ;;  %s1879_s27 = smov 0   ;;  %s1881_s28 = smov 0  }
   0xa   :  { %s1883_s29 = smov 0   ;;  %s1885_s30 = smov 0  }
   0xb   :  { %s1887_s9 = smov 0   ;;  %s1889_s10 = smov 0  }
   0xc LB: > { %2298 = sst [smem:[#allocation16_spill]] %s1796_s27  ;;  %s1910_s11 = sadd.s32 4294967295, %s1816_s10   ;;  %s1816_s10 = sphi %s1889_s10, %s28_s10   ;;  %s1812_s9 = sphi %s1887_s9, %s2325_s9   ;;  %s1808_s30 = sphi %s1885_s30, %s2324_s30   ;;  %s1804_s29 = sphi %s1883_s29, %s2328_s29   ;;  %s1800_s28 = sphi %s1881_s28, %s2327_s28   ;;  %s1796_s27 = sphi %s1879_s27, %s2326_s27  }
   0xd   : > { %2299 = sst [smem:[#allocation17_spill]] %s1812_s9  ;;  %s1326_s12 = sadd.s32 4294967294, %s1816_s10  }
   0xe   : > { %p62_p0 = scmp.ne.s32.totalorder %s1800_s28, %s1796_s27  ;;  %p2288_p1 = scmp.eq.s32.totalorder %s1910_s11, 0 }
   0xf   : > { %p246_p3 = scmp.eq.s32.totalorder %s1326_s12, 1  ;;  %p1327_p5 = scmp.ge.s32.totalorder %s1816_s10, 1 }
  0x10   : > { %p1919_p4 = por %p2288_p1, %p62_p0  ;;  %p253_p7 = scmp.lt.s32.totalorder %s1816_s10, 3 }
  0x11   : > { %p1924_p6 = por %p246_p3, %p62_p0  ;;  %s1818_s16 = smov [#allocation7]  }
  0x12   : > { %s2300_s13 = scalar_select %p1919_p4, 1, 0 }
  0x13   : > { %s2301_s14 = scalar_select %p1924_p6, 1, 0 }
  0x14   : > { %p1929_p8 = pnand %p1327_p5, %p253_p7  ;;  %s265_s17 = sshll.u32 %s1818_s16, 4  ;;  %s1933_s17 = int_to_ptr.vmem [resolvable:$true] %s265_s17 }
  0x15   : > { %2302 = sst [smem:[#allocation18_spill]] %s2301_s14  ;;  %s1819_s19 = smov [#allocation8]  }
  0x16   : > { %s2303_s15 = scalar_select %p1929_p8, 1, 0 }
  0x17   : > { %p1501_p9 = pneg %p1929_p8  ;;  %s281_s20 = sshll.u32 %s1819_s19, 4  ;;  %s1944_s20 = int_to_ptr.vmem [resolvable:$true] %s281_s20 }
  0x18   : > { %s2305_s2 = sld [smem:[#allocation21_spill]] }
  0x19   : > { %p1940_p11 = pnand %p1501_p9, %p2288_p1 }
  0x1b   : > { %p1608_p13 = pneg %p1940_p11 }
  0x1e   : > { %s1606_s23 = scalar_lea.hbm %s2305_s2, 256 }
  0x1f   : > { %p1607_p12 = scmp.ne.s32.totalorder %s2305_s2, %s1606_s23  ;;  %p1613_p5 = scmp.lt.u32.totalorder %s1606_s23, %s2305_s2 }
  0x21   : > { %p1609_p0 = pnand %p1608_p13, %p1607_p12 }
  0x23   : > { %p1610_p3 = pneg %p1609_p0 }
  0x25   : > { %p1615_p7 = pnand %p1613_p5, %p1610_p3 }
  0x27   : > { %1618 = shalt.err (!%p1615_p7)
}
  0x28   : > { %s1619_s16 = scalar_lea.vmem %s1933_s17, 256  ;;  %p1627_p2 = scmp.lt.s32.totalorder %s1933_s17, %s1933_s17 }
  0x29   : > { %p1620_p9 = scmp.ne.s32.totalorder %s1933_s17, %s1619_s16  ;;  %p1628_p12 = scmp.lt.s32.totalorder %s1619_s16, %s1619_s16 }
  0x2b   : > { %p1622_p10 = pnand %p1620_p9, %p1608_p13  ;;  %p1629_p0 = por %p1628_p12, %p1627_p2 }
  0x2d   : > { %p1623_p1 = pneg %p1622_p10 }
  0x2f   : > { %p1630_p6 = pnand %p1629_p0, %p1623_p1 }
  0x31   : > { %1633 = shalt.err (!%p1630_p6)
}
  0x32   : > { %s1820_s19 = smov 64   ;;  %s1821_s21 = smov 4  }
  0x33   : > { %1504 = dma.hbm_to_vmem [thread:$0]  (!%p1940_p11), %s2305_s2, 256, %s1933_s17, [#allocation6], %s1820_s19, %s1820_s19, %s1821_s21  }
  0x34   : > { %s2306_s4 = sld [smem:[#allocation22_spill]] }
  0x3a   : > { %s1634_s26 = scalar_lea.hbm %s2306_s4, 256 }
  0x3b   : > { %p1635_p2 = scmp.ne.s32.totalorder %s2306_s4, %s1634_s26  ;;  %p1641_p10 = scmp.lt.u32.totalorder %s1634_s26, %s2306_s4 }
  0x3d   : > { %p1637_p1 = pnand %p1635_p2, %p1608_p13 }
  0x3f   : > { %p1638_p6 = pneg %p1637_p1 }
  0x41   : > { %p1643_p3 = pnand %p1641_p10, %p1638_p6 }
  0x43   : > { %1646 = shalt.err (!%p1643_p3)
}
  0x44   : > { %s1647_s17 = scalar_lea.vmem %s1944_s20, 256  ;;  %p1655_p12 = scmp.lt.s32.totalorder %s1944_s20, %s1944_s20 }
  0x45   : > { %p1648_p5 = scmp.ne.s32.totalorder %s1944_s20, %s1647_s17  ;;  %p1656_p0 = scmp.lt.s32.totalorder %s1647_s17, %s1647_s17 }
  0x47   : > { %p1650_p7 = pnand %p1648_p5, %p1608_p13  ;;  %p1657_p2 = por %p1656_p0, %p1655_p12 }
  0x49   : > { %p1651_p9 = pneg %p1650_p7 }
  0x4b   : > { %p1658_p1 = pnand %p1657_p2, %p1651_p9 }
  0x4d   : > { %1661 = shalt.err (!%p1658_p1)
}
  0x4e   : > { %1507 = dma.hbm_to_vmem [thread:$0]  (!%p1940_p11), %s2306_s4, 256, %s1944_s20, [#allocation9], %s1820_s19, %s1820_s19, %s1821_s21  }
  0x4f   : > { %s40_s22 = sadd.s32 1, %s1812_s9  ;;  %s49_s23 = sadd.s32 1, %s1804_s29 }
  0x50   : > { %p42_p13 = scmp.ge.s32.totalorder %s40_s22, 2  ;;  %p56_p6 = scmp.ne.s32.totalorder %s1804_s29, %s1800_s28 }
  0x51   : > { %p57_p10 = scmp.eq.s32.totalorder %s1816_s10, 0  ;;  %p1521_p3 = scmp.lt.s32.totalorder %s1816_s10, 2 }
  0x52   : > { %s2330_s22 = smov (%p42_p13, %s40_s22), 0  ;;  %p2308_p7 = scmp.eq.s32.totalorder %s1910_s11, 1 }
  0x53   : > { %2307 = sst [smem:[#allocation19_spill]] %s2330_s22  ;;  %p58_p5 = por %p57_p10, %p56_p6 }
  0x54   : > { %p2008_p9 = por %p2308_p7, %p56_p6  ;;  %s44_s24 = ssub.s32 %s1812_s9, %s2330_s22 }
  0x55   : > { %s304_s25 = sand.u32 1, %s1804_s29   ;;  %p47_p12 = scmp.eq.s32.totalorder %s44_s24, 0 }
  0x56   : > { %s2309_s18 = scalar_select %p2008_p9, 1, 0 }
  0x57   : > { %s2015_s20 = sshll.u32 %s304_s25, 2  ;;  %s1332_s19 = sshll.u32 %s1812_s9, 6 }
  0x58   : > { %s2019_s21 = scalar_select %p47_p12, %s1804_s29, %s49_s23  }
  0x59   : > { %s2024_s16 = scalar_lea.hbm %s2279_s0, %s1332_s19  ;;  %s308_s17 = scalar_lea.vmem [#allocation2], %s2015_s20 }
  0x5a   : > { %2310 = sst [smem:[#allocation20_spill]] %s2019_s21  ;;  %s316_s27 = sshll.u32 %s308_s17, 4  ;;  %s2033_s27 = int_to_ptr.vmem [resolvable:$true] %s316_s27 }
  0x5b   : > { %p2029_p11 = pnand %p1521_p3, %p58_p5  ;;  %s2038_s26 = scalar_lea.hbm %s2280_s1, %s1332_s19 }
  0x5c   : > { %s305_s12 = scalar_lea.sflag [#allocation3], %s304_s25  ;;  %s1662_s2 = scalar_lea.hbm %s2024_s16, 64 }
  0x5d   : > { %p1663_p0 = scmp.ne.s32.totalorder %s2024_s16, %s1662_s2  ;;  %p1664_p2 = pneg %p2029_p11 }
  0x5e   : > { %s1667_s22 = scalar_lea.hbm %s2279_s0, 128  ;;  %p1668_p6 = scmp.lt.u32.totalorder %s2024_s16, %s2279_s0 }
  0x5f   : > { %p1665_p1 = pnand %p1664_p2, %p1663_p0  ;;  %p1669_p10 = scmp.lt.u32.totalorder %s1667_s22, %s1662_s2 }
  0x60   : > { %p1671_p5 = scmp.lt.u32.totalorder %s1662_s2, %s2024_s16 }
  0x61   : > { %p1666_p13 = pneg %p1665_p1  ;;  %p1670_p3 = por %p1669_p10, %p1668_p6 }
  0x63   : > { %p1672_p7 = por %p1671_p5, %p1670_p3 }
  0x65   : > { %p1673_p12 = pnand %p1672_p7, %p1666_p13 }
  0x67   : > { %1676 = shalt.err (!%p1673_p12)
}
  0x68   : > { %s1677_s25 = scalar_lea.vmem %s2033_s27, 64  ;;  %s1822_s4 = smov [#allocation2]  }
  0x69   : > { %p1678_p0 = scmp.ne.s32.totalorder %s2033_s27, %s1677_s25  ;;  %s1682_s19 = sshll.u32 %s1822_s4, 4  ;;  %s1683_s19 = int_to_ptr.vmem [resolvable:$false] %s1682_s19 }
  0x6a   : > { %s1684_s9 = scalar_lea.vmem %s1683_s19, 128  ;;  %p1685_p4 = scmp.lt.s32.totalorder %s2033_s27, %s1683_s19 }
  0x6b   : > { %p1680_p1 = pnand %p1678_p0, %p1664_p2  ;;  %p1686_p6 = scmp.lt.s32.totalorder %s1684_s9, %s1677_s25 }
  0x6d   : > { %p1681_p9 = pneg %p1680_p1  ;;  %p1687_p10 = por %p1686_p6, %p1685_p4 }
  0x6f   : > { %p1688_p3 = pnand %p1687_p10, %p1681_p9 }
  0x71   : > { %1691 = shalt.err (!%p1688_p3)
}
  0x72   : > { %1511 = dma.hbm_to_vmem [thread:$0]  (!%p2029_p11), %s2024_s16, 64, %s2033_s27, %s305_s12  }
  0x73   : > { %s323_s2 = sand.u32 1, %s1816_s10   ;;  %s327_s22 = scalar_lea.vmem [#allocation5], %s2015_s20 }
  0x74   : > { %s334_s21 = sshll.u32 %s327_s22, 4  ;;  %s324_s23 = scalar_lea.sflag [#allocation6], %s323_s2  ;;  %s335_s21 = int_to_ptr.vmem [resolvable:$true] %s334_s21 }
  0x75   : > { %s1692_s24 = scalar_lea.hbm %s2038_s26, 64  ;;  %s1697_s4 = scalar_lea.hbm %s2280_s1, 128 }
  0x76   : > { %p1693_p4 = scmp.ne.s32.totalorder %s2038_s26, %s1692_s24  ;;  %p1698_p5 = scmp.lt.u32.totalorder %s2038_s26, %s2280_s1 }
  0x77   : > { %p1699_p7 = scmp.lt.u32.totalorder %s1697_s4, %s1692_s24  ;;  %p1701_p0 = scmp.lt.u32.totalorder %s1692_s24, %s2038_s26 }
  0x78   : > { %p1695_p9 = pnand %p1693_p4, %p1664_p2 }
  0x79   : > { %p1700_p12 = por %p1699_p7, %p1698_p5 }
  0x7a   : > { %p1696_p13 = pneg %p1695_p9 }
  0x7b   : > { %p1702_p1 = por %p1701_p0, %p1700_p12 }
  0x7d   : > { %p1703_p6 = pnand %p1702_p1, %p1696_p13 }
  0x7f   : > { %1706 = shalt.err (!%p1703_p6)
}
  0x80   : > { %s1707_s20 = scalar_lea.vmem %s335_s21, 64  ;;  %s1823_s16 = smov [#allocation5]  }
  0x81   : > { %p1708_p10 = scmp.ne.s32.totalorder %s335_s21, %s1707_s20  ;;  %s1712_s27 = sshll.u32 %s1823_s16, 4  ;;  %s1713_s27 = int_to_ptr.vmem [resolvable:$false] %s1712_s27 }
  0x82   : > { %s1714_s12 = scalar_lea.vmem %s1713_s27, 128  ;;  %p1715_p9 = scmp.lt.s32.totalorder %s335_s21, %s1713_s27 }
  0x83   : > { %p1710_p3 = pnand %p1708_p10, %p1664_p2  ;;  %p1716_p8 = scmp.lt.s32.totalorder %s1714_s12, %s1707_s20 }
  0x85   : > { %p1711_p4 = pneg %p1710_p3  ;;  %p1717_p5 = por %p1716_p8, %p1715_p9 }
  0x87   : > { %p1718_p7 = pnand %p1717_p5, %p1711_p4 }
  0x89   : > { %1721 = shalt.err (!%p1718_p7)
}
  0x8a   : > { %1514 = dma.hbm_to_vmem [thread:$0]  (!%p2029_p11), %s2038_s26, 64, %s335_s21, %s324_s23  }
  0x8b   : > { %p2312_p13 = scmp.ne.s32.totalorder %s2303_s15, 0 }
  0x8c   : > { %s2089_s2 = sand.u32 (!%p2312_p13), 1, %s1800_s28   ;;  %p2313_p2 = scmp.ne.s32.totalorder (!%p2312_p13), %s2300_s13, 0 }
  0x8d   : > { %343 = sbr.rel (%p2312_p13) target bundleno = 2301 (0x8fd), region = 52  ;;  %s1336_s22 = sshll.u32 (!%p2312_p13), %s2089_s2, 2 }
  0x8e   : > { %s346_s24 = scalar_lea.sflag (!%p2312_p13), [#allocation3], %s2089_s2  ;;  %s349_s17 = scalar_lea.vmem (!%p2312_p13), [#allocation2], %s1336_s22 }
  0x94   : > { %1775 = dma.done.wait (%p2313_p2), %s346_s24, 64  }
  0x95   : > { %1777 = vsyncadd (%p2313_p2), %s346_s24, 4294967232  ;;  %s354_s14 = sand.u32 1, %s1910_s11   ;;  %s358_s15 = scalar_lea.vmem [#allocation5], %s1336_s22 }
  0x96   : > { %s355_s26 = scalar_lea.sflag [#allocation6], %s354_s14 }
  0x97   : > { %1779 = dma.done.wait (%p2313_p2), %s355_s26, 64  }
  0x98   : > { %1781 = vsyncadd (%p2313_p2), %s355_s26, 4294967232  ;;  %p2314_p8 = scmp.eq.s32.totalorder %s1910_s11, 0 }
  0x9a   : > { %1783 = dma.done.wait (%p2314_p8), [#allocation6], 256   ;;  %p2315_p11 = pmov %p2314_p8 }
  0x9b   : > { %p2316_p12 = pmov %p2314_p8 }
  0x9c   : > { %1785 = vsyncadd (%p2315_p11), [#allocation6], 4294967040 }
  0x9d   : > { %1787 = dma.done.wait (%p2316_p12), [#allocation9], 256   ;;  %p2317_p0 = pmov %p2314_p8 }
  0x9e   : > { %v1824_v0 = vmov 0.0   ;;  %vm1825_vm0 = vmmov 0   ;;  %v1586_v1 = vld [vmem:[#allocation8] sm:$0xff]   ;;  %v1587_v2 = vld [vmem:[#allocation7] sm:$0xff]   ;;  %v1588_v3 = vld [vmem:[#allocation8 + $0x8] sm:$0xff]   ;;  %vm430_vm1 = vcmask 261120  }
  0x9f   : > { %1789 = vsyncadd (%p2317_p0), [#allocation9], 4294967040  ;;  %1407 = vmatprep.subr.bf16.mxu1 %v1824_v0  ;;  %1399 = vmatprep.subr.bf16.mxu0 %v1824_v0  ;;  %v1589_v4 = vld [vmem:[#allocation7 + $0x8] sm:$0xff]   ;;  %v406_v5 = vld [vmem:[%s358_s15] sm:$0xf]  ;;  %vm542_vm2 = vcmask 64512  }
  0xa0   : > { %1411 = vmatprep.mubr.msk.bf16.mxu1 %vm1825_vm0, %v1824_v0  ;;  %1403 = vmatprep.mubr.msk.bf16.mxu0 %vm1825_vm0, %v1824_v0  ;;  %v405_v6 = vld [vmem:[%s349_s17] sm:$0xf]  ;;  %v1345_v7 = vld [vmem:[%s2284_s5] ss:$0 sm:$0xff]  ;;  %s1826_s25 = smov 120   ;;  %s1827_s4 = smov 96  }
  0xa1   : > { %1408 = vmatpush3.bf16.msra.mxu1 %v1586_v1  ;;  %1400 = vmatpush3.bf16.msra.mxu0 %v1587_v2  ;;  %v1341_v8 = vld [vmem:[%s2282_s3] ss:$0 sm:$0xff]  ;;  %vm605_vm3 = vcmask 1043456   ;;  %s1828_s19 = smov 88   ;;  %s1829_s9 = smov 112  }
  0xa2   : > { %1409 = vmatprep.subr.bf16.mxu1 %v1824_v0  ;;  %1401 = vmatprep.subr.bf16.mxu0 %v1824_v0  ;;  %s1830_s20 = smov 104   ;;  %v652_v48 = vld [vmem:[%s2285_s6] sm:$0xf]  ;;  %v1353_v53 = vld [vmem:[%s2285_s6 + $0x4] sm:$0xf]  ;;  %s1831_s24 = smov 80  }
  0xa3   : > { %v817_v52 = vsel %vm605_vm3, %v652_v48, 0  ;;  %v771_v54 = vsel %vm605_vm3, %v1353_v53, 0  ;;  %s1832_s17 = smov 72   ;;  %s1340_s13 = sshll.u32 %s2089_s2, 3 }
  0xa4   : > { %p2318_p6 = scmp.ne.s32.totalorder %s2309_s18, 0  ;;  %s1833_s12 = smov [#allocation10]  }
  0xa5   : > { %1410 = vmatpush3.bf16.msra.mxu1 %v1588_v3  ;;  %1402 = vmatpush3.bf16.msra.mxu0 %v1589_v4  ;;  %s1726_s22 = sshll.u32 %s1833_s12, 4  ;;  %s1727_s22 = int_to_ptr.vmem [resolvable:$false] %s1726_s22 }
  0xa6   : > { %1421 = vmatprep.subr.bf16.mxu1 %v1824_v0  ;;  %1415 = vmatprep.subr.bf16.mxu0 %v1824_v0 }
  0xa8   : > { %1412 = vmatmul.mubr.msk.bf16.vlgmr.msra.gmra.mrb[0].mxu1 %vm430_vm1, %v406_v5  ;;  %1404 = vmatmul.mubr.msk.bf16.vlgmr.msra.gmra.mrb[0].mxu0 %vm430_vm1, %v405_v6 }
  0xa9   : > { %1423 = vmatprep.mubr.msk.bf16.mxu1 %vm1825_vm0, %v1824_v0  ;;  %1417 = vmatprep.mubr.msk.bf16.mxu0 %vm1825_vm0, %v1824_v0 }
 0x17b   : > { %v534_v9 = vpop.f32.mrb[0].mxu1  ;;  %v468_v12 = vpop.f32.mrb[0].mxu0 }
 0x17c   : > { %v535_v10 = vadd.f32 %v1345_v7, %v534_v9  ;;  %v1413_v11 = vpop.f32.mrb[1].mxu1  ;;  %v469_v14 = vadd.f32 %v1341_v8, %v468_v12  ;;  %v1405_v15 = vpop.f32.mrb[1].mxu0 }
 0x17d   : > { %v537_v13 = vpop.f32.mrb[2].mxu1  ;;  %v471_v18 = vpop.f32.mrb[2].mxu0 }
 0x17e   : > { %v2132_v16 = vpack.c.bf16 %v535_v10, %v535_v10  ;;  %v1414_v17 = vpop.f32.mrb[3].mxu1  ;;  %v1406_v19 = vpop.f32.mrb[3].mxu0  ;;  %v540_v20 = vpack.c.bf16 %v469_v14, %v469_v14 }
 0x180   : > { %656 = vrot.lane.b32.xlu0 %v2132_v16, %s1826_s25  ;;  %v547_v21 = vsel %vm542_vm2, %v2132_v16, 0 }
 0x181   : > { %1416 = vmatpush3.bf16.xpose.msra.mxu0 %v547_v21 }
 0x182   : > { %1427 = vmatprep.subr.bf16.mxu0 %v1824_v0 }
 0x184   : > { %654 = vrot.lane.b32.xlu0 %v540_v20, %s1826_s25  ;;  %s1366_s25 = sshll.u32 %s1808_s30, 7  ;;  %s1189_s30 = scalar_lea.sflag [#allocation4], %s2089_s2 }
 0x185   : > { %s2229_s16 = scalar_lea.hbm %s2287_s8, %s1366_s25 }
 0x188   : > { %600 = vrot.lane.b32.xlu0 %v2132_v16, %s1827_s4  ;;  %1418 = vmatmul.mubr.msk.bf16.vlgmr.msra.gmra.mrb[4].mxu0 %vm542_vm2, %v540_v20  ;;  %s403_s4 = scalar_lea.vmem [#allocation10], %s1340_s13 }
 0x189   : > { %1429 = vmatprep.mubr.msk.bf16.mxu0 %vm1825_vm0, %v1824_v0 }
 0x1f2   : > { %v657_v22 = vpop.permute.xlu0 %656 }
 0x1f3   : > { %v662_v23 = vsel %vm542_vm2, %v657_v22, 0 }
 0x1f4   : > { %1428 = vmatpush3.bf16.xpose.msra.mxu0 %v662_v23 }
 0x1f5   : > { %1439 = vmatprep.subr.bf16.mxu0 %v1824_v0 }
 0x1f6   : > { %v655_v24 = vpop.permute.xlu0 %654 }
 0x1fa   : > { %v601_v25 = vpop.permute.xlu0 %600 }
 0x1fb   : > { %v607_v26 = vsel %vm605_vm3, %v601_v25, 0  ;;  %1430 = vmatmul.mubr.msk.bf16.vlgmr.msra.gmra.mrb[8].mxu0 %vm542_vm2, %v655_v24 }
 0x1fc   : > { %1422 = vmatpush3.bf16.msra.mxu1 %v607_v26  ;;  %1441 = vmatprep.mubr.msk.bf16.mxu0 %vm1825_vm0, %v1824_v0 }
 0x1fd   : > { %1433 = vmatprep.subr.bf16.mxu1 %v1824_v0  ;;  %1440 = vmatpush3.bf16.msra.mxu0 %v771_v54 }
 0x1fe   : > { %1451 = vmatprep.subr.bf16.mxu0 %v1824_v0 }
 0x25b   : > { %v583_v27 = vpop.f32.mrb[4].mxu0 }
 0x25c   : > { %v1419_v28 = vpop.f32.mrb[5].mxu0  ;;  %v589_v29 = vsel %vm542_vm2, %v583_v27, -inf }
 0x25d   : > { %590 = vmax.xlane.f32.xlu1 %v589_v29  ;;  %v586_v30 = vpop.f32.mrb[6].mxu0 }
 0x25e   : > { %v1420_v31 = vpop.f32.mrb[7].mxu0 }
 0x2ce   : > { %v698_v32 = vpop.f32.mrb[8].mxu0 }
 0x2cf   : > { %v1431_v33 = vpop.f32.mrb[9].mxu0  ;;  %v704_v34 = vsel %vm542_vm2, %v698_v32, -inf }
 0x2d0   : > { %705 = vmax.xlane.f32.xlu1 %v704_v34  ;;  %v701_v35 = vpop.f32.mrb[10].mxu0 }
 0x2d1   : > { %v1432_v36 = vpop.f32.mrb[11].mxu0 }
 0x2e1   : > { %714 = vrot.lane.b32.xlu1 %v2132_v16, %s1828_s19  ;;  %s1203_s19 = sshll.u32 %s403_s4, 4  ;;  %s2231_s19 = int_to_ptr.vmem [resolvable:$true] %s1203_s19 }
 0x2e2   : > { %s1722_s27 = scalar_lea.vmem %s2231_s19, 128  ;;  %p1729_p4 = scmp.lt.s32.totalorder %s2231_s19, %s1727_s22 }
 0x2e3   : > { %p1723_p1 = scmp.ne.s32.totalorder %s2231_s19, %s1722_s27 }
 0x2e5   : > { %861 = vrot.lane.b32.xlu1 %v2132_v16, %s1829_s9  ;;  %p1724_p10 = pnand %p1723_p1, %p2318_p6 }
 0x2e7   : > { %p1725_p3 = pneg %p1724_p10 }
 0x2e9   : > { %859 = vrot.lane.b32.xlu1 %v540_v20, %s1829_s9 }
 0x2ea   : > { %v591_v37 = vpop.xlane.xlu1 %590 }
 0x2eb   : > { %v592_v38 = vsub.f32 %v583_v27, %v591_v37  ;;  %v1358_v37 = vld [vmem:[%s2285_s6 + $0x8] sm:$0xf] }
 0x2ed   : > { %v593_v39 = vmul.f32 1.442695, %v592_v38  ;;  %v976_v38 = vsel %vm605_vm3, %v1358_v37, 0 }
 0x2ef   : > { %1590 = vpow2.f32 %v593_v39 }
 0x2f9   : > { %v1591_v40 = vpop.eup %1590 }
 0x2fa   : > { %v598_v41 = vpack.c.bf16 %v1591_v40, %v1591_v40  ;;  %v595_v42 = vsel %vm542_vm2, %v1591_v40, 0.0 }
 0x2fc   : > { %1424 = vmatmul.mubr.msk.bf16.vlgmr.msra.gmra.mrb[4].mxu1 %vm542_vm2, %v598_v41 }
 0x2fd   : > { %1435 = vmatprep.mubr.msk.bf16.mxu1 %vm1825_vm0, %v1824_v0 }
 0x30d   : > { %596 = vadd.xlane.f32.xlu1 %v595_v42 }
 0x31e   : > { %1019 = vrot.lane.b32.xlu1 %v540_v20, %s1830_s20 }
 0x35d   : > { %v706_v43 = vpop.xlane.xlu1 %705 }
 0x35e   : > { %v707_v44 = vsub.f32 %v698_v32, %v706_v43 }
 0x360   : > { %v708_v45 = vmul.f32 1.442695, %v707_v44 }
 0x361   : > { %v715_v46 = vpop.permute.xlu1 %714 }
 0x362   : > { %1592 = vpow2.f32 %v708_v45  ;;  %v720_v47 = vsel %vm605_vm3, %v715_v46, 0 }
 0x363   : > { %1434 = vmatpush3.bf16.msra.mxu1 %v720_v47 }
 0x364   : > { %1445 = vmatprep.subr.bf16.mxu1 %v1824_v0 }
 0x365   : > { %v862_v55 = vpop.permute.xlu1 %861 }
 0x366   : > { %v867_v12 = vsel %vm542_vm2, %v862_v55, 0 }
 0x369   : > { %v860_v56 = vpop.permute.xlu1 %859 }
 0x36c   : > { %v1593_v49 = vpop.eup %1592 }
 0x36d   : > { %v710_v50 = vsel %vm542_vm2, %v1593_v49, 0.0  ;;  %v713_v51 = vpack.c.bf16 %v1593_v49, %v1593_v49 }
 0x36e   : > { %711 = vadd.xlane.f32.xlu0 %v710_v50 }
 0x36f   : > { %1436 = vmatmul.mubr.msk.bf16.vlgmr.msra.gmra.mrb[8].mxu1 %vm542_vm2, %v713_v51 }
 0x370   : > { %1446 = vmatpush3.bf16.msra.mxu1 %v817_v52  ;;  %1447 = vmatprep.mubr.msk.bf16.mxu1 %vm1825_vm0, %v1824_v0 }
 0x371   : > { %1457 = vmatprep.subr.bf16.mxu1 %v1824_v0 }
 0x384   : > { %919 = vrot.lane.b32.xlu0 %v2132_v16, %s1831_s24  ;;  %s1728_s24 = scalar_lea.vmem %s1727_s22, 256 }
 0x385   : > { %p1730_p9 = scmp.lt.s32.totalorder %s1728_s24, %s1722_s27 }
 0x387   : > { %p1731_p5 = por %p1730_p9, %p1729_p4 }
 0x389   : > { %p1732_p7 = pnand %p1731_p5, %p1725_p3 }
 0x39a   : > { %v597_v57 = vpop.xlane.xlu1 %596 }
 0x39b   : > { %1594 = vrcp.f32 %v597_v57 }
 0x39e   : > { %v1020_v36 = vpop.permute.xlu1 %1019 }
 0x3a5   : > { %v1595_v58 = vpop.eup %1594 }
 0x3cf   : > { %v643_v59 = vpop.f32.mrb[4].mxu1 }
 0x3d0   : > { %v650_v60 = vmul.f32 %v1595_v58, %v643_v59  ;;  %v1425_v61 = vpop.f32.mrb[5].mxu1 }
 0x3d1   : > { %v646_v62 = vpop.f32.mrb[6].mxu1 }
 0x3d2   : > { %v651_v63 = vpack.c.bf16 %v650_v60, %v650_v60  ;;  %v1426_v1 = vpop.f32.mrb[7].mxu1 }
 0x3d4   : > { %1448 = vmatmul.mubr.msk.bf16.vlgmr.msra.gmra.mrb[12].mxu1 %vm542_vm2, %v651_v63 }
 0x3d5   : > { %1459 = vmatprep.mubr.msk.bf16.mxu1 %vm1825_vm0, %v1824_v0 }
 0x3fb   : > { %v712_v2 = vpop.xlane.xlu0 %711 }
 0x3fc   : > { %1596 = vrcp.f32 %v712_v2 }
 0x3ff   : > { %v920_v3 = vpop.permute.xlu0 %919 }
 0x400   : > { %v925_v4 = vsel %vm605_vm3, %v920_v3, 0 }
 0x401   : > { %1458 = vmatpush3.bf16.msra.mxu1 %v925_v4 }
 0x402   : > { %1469 = vmatprep.subr.bf16.mxu1 %v1824_v0 }
 0x406   : > { %v1597_v5 = vpop.eup %1596 }
 0x442   : > { %v756_v6 = vpop.f32.mrb[8].mxu1 }
 0x443   : > { %v763_v7 = vmul.f32 %v1597_v5, %v756_v6  ;;  %v1437_v8 = vpop.f32.mrb[9].mxu1 }
 0x444   : > { %v759_v9 = vpop.f32.mrb[10].mxu1 }
 0x445   : > { %v764_v10 = vpack.c.bf16 %v763_v7, %v763_v7  ;;  %v1438_v11 = vpop.f32.mrb[11].mxu1 }
 0x446   : > { %v1364_v11 = vld [vmem:[%s2286_s7] ss:$0 sm:$0xff] }
 0x447   : > { %1442 = vmatmul.mubr.msk.bf16.vlgmr.msra.gmra.mrb[12].mxu0 %vm542_vm2, %v764_v10 }
 0x448   : > { %1452 = vmatpush3.bf16.xpose.msra.mxu0 %v867_v12  ;;  %1453 = vmatprep.mubr.msk.bf16.mxu0 %vm1825_vm0, %v1824_v0 }
 0x449   : > { %1463 = vmatprep.subr.bf16.mxu0 %v1824_v0 }
 0x44f   : > { %1454 = vmatmul.mubr.msk.bf16.vlgmr.msra.gmra.mrb[16].mxu0 %vm542_vm2, %v860_v56 }
 0x450   : > { %1465 = vmatprep.mubr.msk.bf16.mxu0 %vm1825_vm0, %v1824_v0  ;;  %1464 = vmatpush3.bf16.msra.mxu0 %v976_v38 }
 0x451   : > { %1475 = vmatprep.subr.bf16.mxu0 %v1824_v0 }
 0x4a7   : > { %v853_v13 = vpop.f32.mrb[12].mxu1 }
 0x4a8   : > { %v1449_v14 = vpop.f32.mrb[13].mxu1 }
 0x4a9   : > { %v856_v15 = vpop.f32.mrb[14].mxu1 }
 0x4aa   : > { %v1450_v17 = vpop.f32.mrb[15].mxu1 }
 0x51a   : > { %v807_v18 = vpop.f32.mrb[12].mxu0 }
 0x51b   : > { %v2188_v19 = vadd.f32 %v853_v13, %v807_v18  ;;  %v1443_v20 = vpop.f32.mrb[13].mxu0 }
 0x51c   : > { %v810_v21 = vpop.f32.mrb[14].mxu0 }
 0x51d   : > { %v1444_v22 = vpop.f32.mrb[15].mxu0 }
 0x522   : > { %v903_v23 = vpop.f32.mrb[16].mxu0 }
 0x523   : > { %v1455_v24 = vpop.f32.mrb[17].mxu0  ;;  %v909_v25 = vsel %vm542_vm2, %v903_v23, -inf }
 0x524   : > { %910 = vmax.xlane.f32.xlu0 %v909_v25  ;;  %v906_v26 = vpop.f32.mrb[18].mxu0 }
 0x525   : > { %v1456_v27 = vpop.f32.mrb[19].mxu0 }
 0x53a   : > { %1021 = vrot.lane.b32.xlu0 %v2132_v16, %s1830_s20 }
 0x5b1   : > { %v911_v28 = vpop.xlane.xlu0 %910 }
 0x5b2   : > { %v912_v29 = vsub.f32 %v903_v23, %v911_v28 }
 0x5b4   : > { %v913_v30 = vmul.f32 1.442695, %v912_v29 }
 0x5b5   : > { %v1022_v32 = vpop.permute.xlu0 %1021 }
 0x5b6   : > { %1598 = vpow2.f32 %v913_v30  ;;  %v1027_v35 = vsel %vm542_vm2, %v1022_v32, 0 }
 0x5c0   : > { %v1599_v31 = vpop.eup %1598 }
 0x5c1   : > { %v915_v33 = vsel %vm542_vm2, %v1599_v31, 0.0  ;;  %v918_v34 = vpack.c.bf16 %v1599_v31, %v1599_v31 }
 0x5c2   : > { %916 = vadd.xlane.f32.xlu0 %v915_v33 }
 0x5c3   : > { %1460 = vmatmul.mubr.msk.bf16.vlgmr.msra.gmra.mrb[16].mxu1 %vm542_vm2, %v918_v34 }
 0x5c4   : > { %1470 = vmatpush3.bf16.xpose.msra.mxu1 %v1027_v35  ;;  %1471 = vmatprep.mubr.msk.bf16.mxu1 %vm1825_vm0, %v1824_v0 }
 0x5c5   : > { %1481 = vmatprep.subr.bf16.mxu1 %v1824_v0 }
 0x5cb   : > { %1472 = vmatmul.mubr.msk.bf16.vlgmr.msra.gmra.mrb[20].mxu1 %vm542_vm2, %v1020_v36 }
 0x5cc   : > { %1483 = vmatprep.mubr.msk.bf16.mxu1 %vm1825_vm0, %v1824_v0 }
 0x5d8   : > { %1079 = vrot.lane.b32.xlu0 %v2132_v16, %s1832_s17 }
 0x64f   : > { %v917_v39 = vpop.xlane.xlu0 %916 }
 0x650   : > { %1600 = vrcp.f32 %v917_v39 }
 0x653   : > { %v1080_v44 = vpop.permute.xlu0 %1079 }
 0x654   : > { %v1085_v16 = vsel %vm605_vm3, %v1080_v44, 0 }
 0x65a   : > { %v1601_v40 = vpop.eup %1600 }
 0x696   : > { %v961_v41 = vpop.f32.mrb[16].mxu1 }
 0x697   : > { %v968_v42 = vmul.f32 %v1601_v40, %v961_v41  ;;  %v1461_v43 = vpop.f32.mrb[17].mxu1 }
 0x698   : > { %v964_v45 = vpop.f32.mrb[18].mxu1 }
 0x699   : > { %v969_v46 = vpack.c.bf16 %v968_v42, %v968_v42  ;;  %v1462_v47 = vpop.f32.mrb[19].mxu1 }
 0x69b   : > { %1466 = vmatmul.mubr.msk.bf16.vlgmr.msra.gmra.mrb[20].mxu0 %vm542_vm2, %v969_v46 }
 0x69c   : > { %1476 = vmatpush3.bf16.msra.mxu0 %v1085_v16  ;;  %1477 = vmatprep.mubr.msk.bf16.mxu0 %vm1825_vm0, %v1824_v0  ;;  %v1362_v0 = vld [vmem:[%s2285_s6 + $0xc] sm:$0xf] }
 0x69d   : > { %v1136_v59 = vsel %vm605_vm3, %v1362_v0, 0 }
 0x69e   : > { %v1063_v48 = vpop.f32.mrb[20].mxu1  ;;  %1482 = vmatpush3.bf16.msra.mxu1 %v1136_v59 }
 0x69f   : > { %v1473_v49 = vpop.f32.mrb[21].mxu1  ;;  %v1069_v50 = vsel %vm542_vm2, %v1063_v48, -inf }
 0x6a0   : > { %1070 = vmax.xlane.f32.xlu1 %v1069_v50  ;;  %v1066_v51 = vpop.f32.mrb[22].mxu1 }
 0x6a1   : > { %v1474_v52 = vpop.f32.mrb[23].mxu1 }
 0x72d   : > { %v1071_v53 = vpop.xlane.xlu1 %1070 }
 0x72e   : > { %v1072_v54 = vsub.f32 %v1063_v48, %v1071_v53 }
 0x730   : > { %v1073_v55 = vmul.f32 1.442695, %v1072_v54 }
 0x732   : > { %1602 = vpow2.f32 %v1073_v55 }
 0x73c   : > { %v1603_v56 = vpop.eup %1602 }
 0x73d   : > { %v1075_v57 = vsel %vm542_vm2, %v1603_v56, 0.0  ;;  %v1078_v58 = vpack.c.bf16 %v1603_v56, %v1603_v56 }
 0x73e   : > { %1076 = vadd.xlane.f32.xlu1 %v1075_v57 }
 0x73f   : > { %1478 = vmatmul.mubr.msk.bf16.vlgmr.msra.gmra.mrb[24].mxu0 %vm542_vm2, %v1078_v58 }
 0x76e   : > { %v1012_v60 = vpop.f32.mrb[20].mxu0 }
 0x76f   : > { %v1018_v61 = vadd.f32 %v1012_v60, %v2188_v19  ;;  %v1467_v62 = vpop.f32.mrb[21].mxu0 }
 0x770   : > { %v1015_v63 = vpop.f32.mrb[22].mxu0 }
 0x771   : > { %v1468_v1 = vpop.f32.mrb[23].mxu0 }
 0x7cb   : > { %v1077_v2 = vpop.xlane.xlu1 %1076 }
 0x7cc   : > { %1604 = vrcp.f32 %v1077_v2 }
 0x7d6   : > { %v1605_v3 = vpop.eup %1604 }
 0x812   : > { %v1121_v4 = vpop.f32.mrb[24].mxu0 }
 0x813   : > { %v1128_v5 = vmul.f32 %v1605_v3, %v1121_v4  ;;  %v1479_v6 = vpop.f32.mrb[25].mxu0 }
 0x814   : > { %v1124_v7 = vpop.f32.mrb[26].mxu0 }
 0x815   : > { %v1129_v8 = vpack.c.bf16 %v1128_v5, %v1128_v5  ;;  %v1480_v9 = vpop.f32.mrb[27].mxu0 }
 0x817   : > { %1484 = vmatmul.mubr.msk.bf16.vlgmr.msra.gmra.mrb[24].mxu1 %vm542_vm2, %v1129_v8 }
 0x8ea   : > { %v1172_v10 = vpop.f32.mrb[24].mxu1 }
 0x8eb   : > { %v1178_v12 = vadd.f32 %v1172_v10, %v1018_v61  ;;  %v1485_v13 = vpop.f32.mrb[25].mxu1 }
 0x8ec   : > { %v1175_v14 = vpop.f32.mrb[26].mxu1 }
 0x8ed   : > { %v1186_v15 = vadd.f32 %v1364_v11, %v1178_v12  ;;  %v1486_v17 = vpop.f32.mrb[27].mxu1 }
 0x8ef   : > { %1187 = vst.msk [vmem:[%s403_s4] sm:$0xff] %vm430_vm1, %v1186_v15 }
 0x8f0   : > { %1735 = shalt.err (!%p1732_p7)
}
 0x8f1   : > { %s1736_s2 = scalar_lea.hbm %s2229_s16, 128  ;;  %s1740_s26 = scalar_lea.hbm %s2287_s8, 256 }
 0x8f2   : > { %p1737_p13 = scmp.ne.s32.totalorder %s2229_s16, %s1736_s2  ;;  %p1741_p11 = scmp.lt.u32.totalorder %s2229_s16, %s2287_s8 }
 0x8f3   : > { %p1742_p12 = scmp.lt.u32.totalorder %s1740_s26, %s1736_s2  ;;  %p1744_p1 = scmp.lt.u32.totalorder %s1736_s2, %s2229_s16 }
 0x8f4   : > { %p1738_p2 = pnand %p1737_p13, %p2318_p6 }
 0x8f5   : > { %p1743_p0 = por %p1742_p12, %p1741_p11 }
 0x8f6   : > { %p1739_p8 = pneg %p1738_p2 }
 0x8f7   : > { %p1745_p10 = por %p1744_p1, %p1743_p0 }
 0x8f9   : > { %p1746_p3 = pnand %p1745_p10, %p1739_p8 }
 0x8fb   : > { %1749 = shalt.err (!%p1746_p3)
}
 0x8fc   : > { %1499 = dma.vmem_to_hbm [thread:$0]  (%p2318_p6), %s2231_s19, 128, %s2229_s16, %s1189_s30  }
 0x8fd PF: > { %s2319_s13 = sld [smem:[#allocation16_spill]]  ;;  %s2320_s21 = sld [smem:[#allocation18_spill]] }
 0x8fe   : > { %p2322_p9 = scmp.ge.s32.totalorder %s1816_s10, 2 }
 0x903   : > { %s1215_s23 = sand.u32 1, %s2319_s13   ;;  %p2321_p4 = scmp.ne.s32.totalorder %s2320_s21, 0 }
 0x904   : > { %s1216_s25 = scalar_lea.sflag [#allocation4], %s1215_s23 }
 0x905   : > { %p1516_p5 = pnand %p2322_p9, %p2321_p4 }
 0x907   : > { %1791 = dma.done.wait (!%p1516_p5), %s1216_s25, 128  }
 0x908   : > { %1793 = vsyncadd (!%p1516_p5), %s1216_s25, 4294967168  ;;  %s28_s10 = sadd.s32 1, %s1816_s10   ;;  %s2323_s18 = sld [smem:[#allocation20_spill]] }
 0x909   : > { %p25_p7 = scmp.ge.s32.totalorder %s28_s10, 4   ;;  %s2324_s30 = sld [smem:[#allocation17_spill]] }
 0x90a   : > { %s2325_s9 = sld [smem:[#allocation19_spill]]  ;;  %s2326_s27 = smov %s1800_s28 }
 0x90b   : > { %s2327_s28 = smov %s1804_s29  ;;  %27 = sbr.rel (!%p25_p7) target bundleno = 12 (0xc), region = 121 }
 0x90e   : > { %s2328_s29 = smov %s2323_s18 }
 0x912   :  { %1221 = vsyncpa [#allocation3], 1 }
 0x913   :  { %1223 = vsyncpa [#allocation3 + $0x1], 1 }
 0x914   :  { %1224 = vsyncpa [#allocation6], 1 }
 0x915   :  { %1226 = vsyncpa [#allocation6 + $0x1], 1 }
 0x916   :  { %1227 = vsyncpa [#allocation9], 1 }
 0x917   :  { %1228 = vsyncpa [#allocation4], 1 }
 0x918   :  { %1230 = vsyncpa [#allocation4 + $0x1], 1 }

</bundles_post_ra>
